<compile_context>
chip_gen: v6e
topology: v6e:2x2x1
jax: 0.10.0
libtpu: 0.0.40
codegen_flags: <defaults>
</compile_context>

<pallas_src>
import jax
import jax.numpy as jnp
from jax.experimental import pallas as pl
from jax.experimental.pallas import tpu as pltpu

_LANE = 128
_SUBLANE = 8


def _round_up(x, m):
    return ((x + m - 1) // m) * m


# --------------------------------------------------------------------------- #
# Kernel
# --------------------------------------------------------------------------- #
def _residual_transform_kernel(
    x_ref,                    # (tm, din_p)  bf16 activations
    w0_ref, b0_ref,           # Linear(dim_in -> internal)
    w1_ref, b1_ref,           # ResidualBlock Linear #1 (internal -> internal)
    w2_ref, b2_ref,           # ResidualBlock Linear #2 (internal -> internal)
    w3_ref, b3_ref,           # Linear(internal -> 2*dim_out)
    out_ref,                  # (tm, dout_p) f32 fused lane-dense slab
):
    cdt = w0_ref.dtype        # matmul operand dtype (bf16); accumulation is f32
    x = x_ref[...]            # already in matmul dtype (no in-kernel pack pass)

    # model[0:2] : Linear + ReLU          (bias/ReLU stay f32 on the VPU)
    h0 = jnp.dot(x, w0_ref[...], preferred_element_type=jnp.float32) + b0_ref[...]
    h0 = jnp.maximum(h0, 0.0)

    # ResidualBlock: Linear -> ReLU -> Linear, + identity, ReLU
    h1 = jnp.dot(h0.astype(cdt), w1_ref[...],
                 preferred_element_type=jnp.float32) + b1_ref[...]
    h1 = jnp.maximum(h1, 0.0)
    h2 = jnp.dot(h1.astype(cdt), w2_ref[...],
                 preferred_element_type=jnp.float32) + b2_ref[...]
    r = jnp.maximum(h2 + h0, 0.0)

    # final Linear(internal -> 2*dim_out), one unmasked lane-dense store
    out = jnp.dot(r.astype(cdt), w3_ref[...],
                  preferred_element_type=jnp.float32) + b3_ref[...]
    out_ref[...] = out.astype(out_ref.dtype)


def _resident_spec(shape):
    """Constant-index BlockSpec; single-buffered (fetched once)."""
    try:
        return pl.BlockSpec(shape, lambda i: (0, 0), pipeline_mode=pl.Buffered(1))
    except TypeError:
        # jax version without pipeline_mode kwarg: default double-buffering.
        return pl.BlockSpec(shape, lambda i: (0, 0))


# --------------------------------------------------------------------------- #
# One-time parameter preparation (padding + bf16 cast hoisted off the hot path)
# --------------------------------------------------------------------------- #
def prepare_params(params, dim_in, dim_out, matmul_dtype=jnp.bfloat16):
    internal = params["w0"].shape[1]
    n_out = 2 * dim_out
    din_p = _round_up(dim_in, _LANE)
    dint_p = _round_up(internal, _LANE)
    dout_p = _round_up(n_out, _LANE)

    def pad2(a, rows, cols, dtype):
        a = jnp.asarray(a, jnp.float32)
        return jnp.pad(a, ((0, rows - a.shape[0]),
                           (0, cols - a.shape[1]))).astype(dtype)

    prepped = {
        # zero-padded input rows / output cols keep padded lanes exactly 0
        "w0": pad2(params["w0"], din_p, dint_p, matmul_dtype),
        "b0": pad2(params["b0"], 1, dint_p, jnp.float32),
        "w1": pad2(params["w1"], dint_p, dint_p, matmul_dtype),
        "b1": pad2(params["b1"], 1, dint_p, jnp.float32),
        "w2": pad2(params["w2"], dint_p, dint_p, matmul_dtype),
        "b2": pad2(params["b2"], 1, dint_p, jnp.float32),
        "w3": pad2(params["w3"], dint_p, dout_p, matmul_dtype),
        "b3": pad2(params["b3"], 1, dout_p, jnp.float32),
    }
    meta = dict(dim_in=dim_in, dim_out=dim_out, internal=internal,
                din_p=din_p, dint_p=dint_p, dout_p=dout_p,
                matmul_dtype=matmul_dtype)
    return prepped, meta


# --------------------------------------------------------------------------- #
# Forward wrapper
# --------------------------------------------------------------------------- #
def simple_residual_transform(x, prepped, meta, *, tm=None):
    """x: (B, dim_in) float32. prepped/meta from prepare_params()."""
    B, dim_in = x.shape
    assert dim_in == meta["dim_in"]
    din_p, dint_p, dout_p = meta["din_p"], meta["dint_p"], meta["dout_p"]
    dim_out, n_out = meta["dim_out"], 2 * meta["dim_out"]
    mdt = meta["matmul_dtype"]

    # Batch tile: large enough to fill the MXU M dim / amortize per-step
    # overhead, but >=2 grid steps when possible so both v7x TCs get work.
    if tm is None:
        b8 = _round_up(B, _SUBLANE)
        if b8 <= 2 * _SUBLANE:
            tm = b8
        else:
            tm = max(_SUBLANE, min(256, (b8 // 2) // _SUBLANE * _SUBLANE))
    tm = _round_up(tm, _SUBLANE)
    B_pad = _round_up(B, tm)          # ragged batch handled by zero padding

    # x carried in matmul dtype (bf16): half the DMA bytes + VMEM for its tile.
    x_c = x.astype(mdt)
    if (B_pad, din_p) != x_c.shape:
        x_c = jnp.pad(x_c, ((0, B_pad - B), (0, din_p - dim_in)))

    # Explicit scoped-VMEM budget from the actual buffer sizes (+headroom).
    bpe = jnp.dtype(mdt).itemsize
    w_bytes = (din_p * dint_p + 2 * dint_p * dint_p + dint_p * dout_p) * bpe
    b_bytes = (3 * dint_p + dout_p) * 4
    x_bytes = 2 * tm * din_p * bpe          # double-buffered input tile
    o_bytes = 2 * tm * dout_p * 4           # double-buffered f32 output tile
    act_bytes = 4 * tm * dint_p * 4         # f32 intermediates (h0,h1,h2,r)
    vmem_bytes = int(1.5 * (w_bytes + b_bytes + x_bytes + o_bytes + act_bytes))
    vmem_bytes = min(max(vmem_bytes + (4 << 20), 16 << 20), 64 << 20)

    # TODO(synk): for very large internal dims (dint_p >~ 3-4K on v7x's 64 MiB/TC
    # VMEM) the weight-resident design should switch to a K/N-tiled grid with an
    # f32 accumulator + pl.when init/finalize instead of keeping all weights
    # resident; not needed at these sizes.

    grid_spec = pltpu.PrefetchScalarGridSpec(
        num_scalar_prefetch=0,
        grid=(B_pad // tm,),
        in_specs=[
            pl.BlockSpec((tm, din_p), lambda i: (i, 0)),              # x (tiled)
            _resident_spec((din_p, dint_p)), _resident_spec((1, dint_p)),   # w0, b0
            _resident_spec((dint_p, dint_p)), _resident_spec((1, dint_p)),  # w1, b1
            _resident_spec((dint_p, dint_p)), _resident_spec((1, dint_p)),  # w2, b2
            _resident_spec((dint_p, dout_p)), _resident_spec((1, dout_p)),  # w3, b3
        ],
        out_specs=pl.BlockSpec((tm, dout_p), lambda i: (i, 0)),       # fused slab
    )

    out = pl.pallas_call(
        _residual_transform_kernel,
        out_shape=jax.ShapeDtypeStruct((B_pad, dout_p), jnp.float32),
        grid_spec=grid_spec,
        compiler_params=pltpu.CompilerParams(
            dimension_semantics=("parallel",),
            vmem_limit_bytes=vmem_bytes,
        ),
    )(x_c, prepped["w0"], prepped["b0"], prepped["w1"], prepped["b1"],
      prepped["w2"], prepped["b2"], prepped["w3"], prepped["b3"])

    # torch.chunk(out, dim=1, chunks=2) as plain XLA slices in the wrapper
    log_s = out[:B, :dim_out]
    t = out[:B, dim_out:n_out]
    return log_s, t


# --------------------------------------------------------------------------- #
# Param init + pure-JAX reference
# --------------------------------------------------------------------------- #
def init_params(key, dim_in, dim_out, inflate_coef=1):
    internal = int(dim_in * inflate_coef)
    ks = jax.random.split(key, 8)

    def lin(kw, kb, fan_in, fan_out):
        bound = 1.0 / jnp.sqrt(fan_in)
        w = jax.random.uniform(kw, (fan_in, fan_out), jnp.float32, -bound, bound)
        b = jax.random.uniform(kb, (1, fan_out), jnp.float32, -bound, bound)
        return w, b

    w0, b0 = lin(ks[0], ks[1], dim_in, internal)
    w1, b1 = lin(ks[2], ks[3], internal, internal)
    w2, b2 = lin(ks[4], ks[5], internal, internal)
    w3, b3 = lin(ks[6], ks[7], internal, 2 * dim_out)
    return {"w0": w0, "b0": b0, "w1": w1, "b1": b1,
            "w2": w2, "b2": b2, "w3": w3, "b3": b3}


def reference_forward(x, params, dim_out, matmul_dtype=jnp.bfloat16):
    """Pure-JAX reference with the same bf16-operand / f32-accumulate matmuls."""
    def lin(h, w, b):
        return jnp.dot(h.astype(matmul_dtype), w.astype(matmul_dtype),
                       preferred_element_type=jnp.float32) + b
    h0 = jax.nn.relu(lin(x, params["w0"], params["b0"]))
    h1 = jax.nn.relu(lin(h0, params["w1"], params["b1"]))
    h2 = lin(h1, params["w2"], params["b2"])
    r = jax.nn.relu(h2 + h0)
    out = lin(r, params["w3"], params["b3"])
    return out[:, :dim_out], out[:, dim_out:]


if __name__ == "__main__":
    key = jax.random.PRNGKey(0)
    k_x, k_p = jax.random.split(key)

    B, dim_in, dim_out = 64, 32, 16  # internal_dim = dim_in * inflate_coef = 32
    x = jax.random.normal(k_x, (B, dim_in), jnp.float32)
    params = init_params(k_p, dim_in, dim_out, inflate_coef=1)

    # one-time prep (padding + bf16 casts off the hot path)
    prepped, meta = prepare_params(params, dim_in, dim_out)
    jax.block_until_ready(prepped)

    log_s, t = simple_residual_transform(x, prepped, meta)
    jax.block_until_ready((log_s, t))

    # shape sanity (torch.chunk semantics) + numerical check vs pure-JAX reference
    assert log_s.shape == (B, dim_out) and t.shape == (B, dim_out)
    ref_log_s, ref_t = reference_forward(x, params, dim_out)
    assert jnp.allclose(log_s, ref_log_s, atol=1e-2, rtol=1e-2)
    assert jnp.allclose(t, ref_t, atol=1e-2, rtol=1e-2)
    print("KERNEL_OK")
</pallas_src>

<mosaic_0001>
module attributes {stable_mosaic.version = 11 : i64} {
  func.func @_residual_transform_kernel(%arg0: i32, %arg1: memref<32x128xbf16, #tpu.memory_space<vmem>>, %arg2: memref<128x128xbf16, #tpu.memory_space<vmem>>, %arg3: memref<1x128xf32, #tpu.memory_space<vmem>>, %arg4: memref<128x128xbf16, #tpu.memory_space<vmem>>, %arg5: memref<1x128xf32, #tpu.memory_space<vmem>>, %arg6: memref<128x128xbf16, #tpu.memory_space<vmem>>, %arg7: memref<1x128xf32, #tpu.memory_space<vmem>>, %arg8: memref<128x128xbf16, #tpu.memory_space<vmem>>, %arg9: memref<1x128xf32, #tpu.memory_space<vmem>>, %arg10: memref<32x128xf32, #tpu.memory_space<vmem>>) attributes {dimension_semantics = [#tpu.dimension_semantics<parallel>], iteration_bounds = array<i64: 2>, scalar_prefetch = 0 : i64, scratch_operands = 0 : i64, tpu.core_type = #tpu.core_type<tc>, window_params = [{transform_indices = @transform_0, window_bounds = array<i64: 32, 128>}, {pipeline_mode = #tpu.pipeline_mode<synchronous>, transform_indices = @transform_1, window_bounds = array<i64: 128, 128>}, {pipeline_mode = #tpu.pipeline_mode<synchronous>, transform_indices = @transform_2, window_bounds = array<i64: 1, 128>}, {pipeline_mode = #tpu.pipeline_mode<synchronous>, transform_indices = @transform_3, window_bounds = array<i64: 128, 128>}, {pipeline_mode = #tpu.pipeline_mode<synchronous>, transform_indices = @transform_4, window_bounds = array<i64: 1, 128>}, {pipeline_mode = #tpu.pipeline_mode<synchronous>, transform_indices = @transform_5, window_bounds = array<i64: 128, 128>}, {pipeline_mode = #tpu.pipeline_mode<synchronous>, transform_indices = @transform_6, window_bounds = array<i64: 1, 128>}, {pipeline_mode = #tpu.pipeline_mode<synchronous>, transform_indices = @transform_7, window_bounds = array<i64: 128, 128>}, {pipeline_mode = #tpu.pipeline_mode<synchronous>, transform_indices = @transform_8, window_bounds = array<i64: 1, 128>}, {transform_indices = @transform_9, window_bounds = array<i64: 32, 128>}]} {
    %c0 = arith.constant 0 : index
    %c0_0 = arith.constant 0 : index
    %0 = vector.load %arg1[%c0, %c0_0] : memref<32x128xbf16, #tpu.memory_space<vmem>>, vector<32x128xbf16>
    %c0_1 = arith.constant 0 : index
    %c0_2 = arith.constant 0 : index
    %1 = vector.load %arg2[%c0_1, %c0_2] : memref<128x128xbf16, #tpu.memory_space<vmem>>, vector<128x128xbf16>
    %cst = arith.constant dense<0.000000e+00> : vector<32x128xf32>
    %2 = tpu.matmul %0, %1, %cst {dimension_numbers = #tpu.dot_dimension_numbers<[1], [0], [0], [1], [0, 0, 1, 1], [], []>} : vector<32x128xbf16>, vector<128x128xbf16>, vector<32x128xf32> -> vector<32x128xf32>
    %c0_3 = arith.constant 0 : index
    %c0_4 = arith.constant 0 : index
    %3 = vector.load %arg3[%c0_3, %c0_4] : memref<1x128xf32, #tpu.memory_space<vmem>>, vector<1x128xf32>
    %4 = vector.broadcast %3 : vector<1x128xf32> to vector<32x128xf32>
    %5 = arith.addf %2, %4 : vector<32x128xf32>
    %cst_5 = arith.constant 0.000000e+00 : f32
    %6 = vector.broadcast %cst_5 : f32 to vector<32x128xf32>
    %7 = arith.maximumf %5, %6 : vector<32x128xf32>
    %8 = arith.truncf %7 : vector<32x128xf32> to vector<32x128xbf16>
    %c0_6 = arith.constant 0 : index
    %c0_7 = arith.constant 0 : index
    %9 = vector.load %arg4[%c0_6, %c0_7] : memref<128x128xbf16, #tpu.memory_space<vmem>>, vector<128x128xbf16>
    %cst_8 = arith.constant dense<0.000000e+00> : vector<32x128xf32>
    %10 = tpu.matmul %8, %9, %cst_8 {dimension_numbers = #tpu.dot_dimension_numbers<[1], [0], [0], [1], [0, 0, 1, 1], [], []>} : vector<32x128xbf16>, vector<128x128xbf16>, vector<32x128xf32> -> vector<32x128xf32>
    %c0_9 = arith.constant 0 : index
    %c0_10 = arith.constant 0 : index
    %11 = vector.load %arg5[%c0_9, %c0_10] : memref<1x128xf32, #tpu.memory_space<vmem>>, vector<1x128xf32>
    %12 = vector.broadcast %11 : vector<1x128xf32> to vector<32x128xf32>
    %13 = arith.addf %10, %12 : vector<32x128xf32>
    %cst_11 = arith.constant 0.000000e+00 : f32
    %14 = vector.broadcast %cst_11 : f32 to vector<32x128xf32>
    %15 = arith.maximumf %13, %14 : vector<32x128xf32>
    %16 = arith.truncf %15 : vector<32x128xf32> to vector<32x128xbf16>
    %c0_12 = arith.constant 0 : index
    %c0_13 = arith.constant 0 : index
    %17 = vector.load %arg6[%c0_12, %c0_13] : memref<128x128xbf16, #tpu.memory_space<vmem>>, vector<128x128xbf16>
    %cst_14 = arith.constant dense<0.000000e+00> : vector<32x128xf32>
    %18 = tpu.matmul %16, %17, %cst_14 {dimension_numbers = #tpu.dot_dimension_numbers<[1], [0], [0], [1], [0, 0, 1, 1], [], []>} : vector<32x128xbf16>, vector<128x128xbf16>, vector<32x128xf32> -> vector<32x128xf32>
    %c0_15 = arith.constant 0 : index
    %c0_16 = arith.constant 0 : index
    %19 = vector.load %arg7[%c0_15, %c0_16] : memref<1x128xf32, #tpu.memory_space<vmem>>, vector<1x128xf32>
    %20 = vector.broadcast %19 : vector<1x128xf32> to vector<32x128xf32>
    %21 = arith.addf %18, %20 : vector<32x128xf32>
    %22 = arith.addf %21, %7 : vector<32x128xf32>
    %cst_17 = arith.constant 0.000000e+00 : f32
    %23 = vector.broadcast %cst_17 : f32 to vector<32x128xf32>
    %24 = arith.maximumf %22, %23 : vector<32x128xf32>
    %25 = arith.truncf %24 : vector<32x128xf32> to vector<32x128xbf16>
    %c0_18 = arith.constant 0 : index
    %c0_19 = arith.constant 0 : index
    %26 = vector.load %arg8[%c0_18, %c0_19] : memref<128x128xbf16, #tpu.memory_space<vmem>>, vector<128x128xbf16>
    %cst_20 = arith.constant dense<0.000000e+00> : vector<32x128xf32>
    %27 = tpu.matmul %25, %26, %cst_20 {dimension_numbers = #tpu.dot_dimension_numbers<[1], [0], [0], [1], [0, 0, 1, 1], [], []>} : vector<32x128xbf16>, vector<128x128xbf16>, vector<32x128xf32> -> vector<32x128xf32>
    %c0_21 = arith.constant 0 : index
    %c0_22 = arith.constant 0 : index
    %28 = vector.load %arg9[%c0_21, %c0_22] : memref<1x128xf32, #tpu.memory_space<vmem>>, vector<1x128xf32>
    %29 = vector.broadcast %28 : vector<1x128xf32> to vector<32x128xf32>
    %30 = arith.addf %27, %29 : vector<32x128xf32>
    %c0_23 = arith.constant 0 : index
    %c0_24 = arith.constant 0 : index
    %31 = vector.load %arg10[%c0_23, %c0_24] : memref<32x128xf32, #tpu.memory_space<vmem>>, vector<32x128xf32>
    tpu.vector_store %arg10[%c0_23, %c0_24], %30 {strides = array<i32>} : memref<32x128xf32, #tpu.memory_space<vmem>>, vector<32x128xf32>,
    return
  }
  func.func @transform_0(%arg0: i32) -> (i32, i32) {
    %c0_i32 = arith.constant 0 : i32
    %c0_i32_0 = arith.constant 0 : i32
    return %arg0, %c0_i32 : i32, i32
  }
  func.func @transform_1(%arg0: i32) -> (i32, i32) {
    %c0_i32 = arith.constant 0 : i32
    %c0_i32_0 = arith.constant 0 : i32
    %c0_i32_1 = arith.constant 0 : i32
    return %c0_i32, %c0_i32_0 : i32, i32
  }
  func.func @transform_2(%arg0: i32) -> (i32, i32) {
    %c0_i32 = arith.constant 0 : i32
    %c0_i32_0 = arith.constant 0 : i32
    %c0_i32_1 = arith.constant 0 : i32
    return %c0_i32, %c0_i32_0 : i32, i32
  }
  func.func @transform_3(%arg0: i32) -> (i32, i32) {
    %c0_i32 = arith.constant 0 : i32
    %c0_i32_0 = arith.constant 0 : i32
    %c0_i32_1 = arith.constant 0 : i32
    return %c0_i32, %c0_i32_0 : i32, i32
  }
  func.func @transform_4(%arg0: i32) -> (i32, i32) {
    %c0_i32 = arith.constant 0 : i32
    %c0_i32_0 = arith.constant 0 : i32
    %c0_i32_1 = arith.constant 0 : i32
    return %c0_i32, %c0_i32_0 : i32, i32
  }
  func.func @transform_5(%arg0: i32) -> (i32, i32) {
    %c0_i32 = arith.constant 0 : i32
    %c0_i32_0 = arith.constant 0 : i32
    %c0_i32_1 = arith.constant 0 : i32
    return %c0_i32, %c0_i32_0 : i32, i32
  }
  func.func @transform_6(%arg0: i32) -> (i32, i32) {
    %c0_i32 = arith.constant 0 : i32
    %c0_i32_0 = arith.constant 0 : i32
    %c0_i32_1 = arith.constant 0 : i32
    return %c0_i32, %c0_i32_0 : i32, i32
  }
  func.func @transform_7(%arg0: i32) -> (i32, i32) {
    %c0_i32 = arith.constant 0 : i32
    %c0_i32_0 = arith.constant 0 : i32
    %c0_i32_1 = arith.constant 0 : i32
    return %c0_i32, %c0_i32_0 : i32, i32
  }
  func.func @transform_8(%arg0: i32) -> (i32, i32) {
    %c0_i32 = arith.constant 0 : i32
    %c0_i32_0 = arith.constant 0 : i32
    %c0_i32_1 = arith.constant 0 : i32
    return %c0_i32, %c0_i32_0 : i32, i32
  }
  func.func @transform_9(%arg0: i32) -> (i32, i32) {
    %c0_i32 = arith.constant 0 : i32
    %c0_i32_0 = arith.constant 0 : i32
    return %arg0, %c0_i32 : i32, i32
  }
}

</mosaic_0001>

<bundles_post_ra>
// kernel: tpu_custom_call.1
= control target key start
LH: loop header
LB: loop body
LE: loop exit
PB: predicated region body
PF: predicated region fallthrough
CT: control target
= control target key end

     0   :  { %s1900_s0 = inlined_call_operand.hbm [shape: bf16[64,128], index: 0, kind: input, shape index: {}]   ;;  %s1901_s1 = inlined_call_operand.hbm [shape: bf16[128,128], index: 1, kind: input, shape index: {}]   ;;  %s1902_s2 = inlined_call_operand.vmem [shape: f32[1,128], index: 2, kind: input, shape index: {}]   ;;  %s1903_s3 = inlined_call_operand.hbm [shape: bf16[128,128], index: 3, kind: input, shape index: {}]   ;;  %s1904_s4 = inlined_call_operand.vmem [shape: f32[1,128], index: 4, kind: input, shape index: {}]   ;;  %s1905_s5 = inlined_call_operand.hbm [shape: bf16[128,128], index: 5, kind: input, shape index: {}]   ;;  %s1906_s6 = inlined_call_operand.vmem [shape: f32[1,128], index: 6, kind: input, shape index: {}]   ;;  %s1907_s7 = inlined_call_operand.hbm [shape: bf16[128,128], index: 7, kind: input, shape index: {}]   ;;  %s1908_s8 = inlined_call_operand.vmem [shape: f32[1,128], index: 8, kind: input, shape index: {}]   ;;  %s1909_s9 = inlined_call_operand.hbm [shape: f32[64,128], index: 9, kind: output, shape index: {}]  }
   0x1   :  { %1916 = sst [smem:[#allocation16_spill]] %s1901_s1 }
   0x2   :  { %1917 = sst [smem:[#allocation17_spill]] %s1903_s3 }
   0x3   :  { %1918 = sst [smem:[#allocation18_spill]] %s1905_s5 }
   0x4   :  { %14 = vsyncpa [#allocation3], 0 }
   0x5   :  { %16 = vsyncpa [#allocation3 + $0x1], 0 }
   0x6   :  { %17 = vsyncpa [#allocation6], 0 }
   0x7   :  { %18 = vsyncpa [#allocation9], 0 }
   0x8   :  { %19 = vsyncpa [#allocation4], 0 }
   0x9   :  { %21 = vsyncpa [#allocation4 + $0x1], 0  ;;  %s1632_s30 = smov 0   ;;  %s1634_s10 = smov 0  }
   0xa   :  { %s1636_s11 = smov 0   ;;  %s1638_s12 = smov 0  }
   0xb LB: > { %s1653_s13 = sadd.s32 4294967295, %s1570_s12   ;;  %s1059_s14 = sadd.s32 4294967294, %s1570_s12   ;;  %s1570_s12 = sphi %s1638_s12, %s1942_s12   ;;  %s1566_s11 = sphi %s1636_s11, %s1941_s11   ;;  %s1562_s10 = sphi %s1634_s10, %s1940_s10   ;;  %s1558_s30 = sphi %s1632_s30, %s1939_s30  }
   0xc   : > { %p47_p0 = scmp.ne.s32.totalorder %s1562_s10, %s1558_s30  ;;  %p1910_p1 = scmp.eq.s32.totalorder %s1653_s13, 0 }
   0xd   : > { %p239_p2 = scmp.eq.s32.totalorder %s1653_s13, 1  ;;  %p245_p3 = scmp.eq.s32.totalorder %s1059_s14, 1 }
   0xe   : > { %p1662_p4 = por %p1910_p1, %p47_p0  ;;  %p1060_p5 = scmp.ge.s32.totalorder %s1570_s12, 1 }
   0xf   : > { %p1667_p6 = por %p245_p3, %p47_p0  ;;  %p252_p7 = scmp.lt.s32.totalorder %s1570_s12, 3 }
  0x10   : > { %s1919_s15 = scalar_select %p1662_p4, 1, 0 }
  0x11   : > { %s1920_s16 = scalar_select %p1667_p6, 1, 0 }
  0x12   : > { %p1672_p8 = pnand %p1060_p5, %p252_p7  ;;  %s1572_s18 = smov [#allocation5]  }
  0x13   : > { %s264_s19 = sshll.u32 %s1572_s18, 4  ;;  %s1573_s21 = smov [#allocation8]   ;;  %s265_s19 = int_to_ptr.vmem [resolvable:$true] %s264_s19 }
  0x14   : > { %s1921_s17 = scalar_select %p1672_p8, 1, 0 }
  0x15   : > { %p1261_p9 = pneg %p1672_p8  ;;  %s296_s22 = sshll.u32 %s1573_s21, 4  ;;  %s297_s22 = int_to_ptr.vmem [resolvable:$true] %s296_s22 }
  0x16   : > { %s1574_s23 = smov [#allocation7]   ;;  %s1377_s25 = scalar_lea.vmem %s265_s19, 1024 }
  0x17   : > { %p1681_p11 = pnand %p1261_p9, %p1910_p1  ;;  %s280_s24 = sshll.u32 %s1574_s23, 4  ;;  %s281_s24 = int_to_ptr.vmem [resolvable:$true] %s280_s24 }
  0x18   : > { %p1378_p13 = scmp.ne.s32.totalorder %s265_s19, %s1377_s25  ;;  %p1385_p5 = scmp.lt.s32.totalorder %s265_s19, %s265_s19 }
  0x19   : > { %p1368_p12 = pneg %p1681_p11  ;;  %p1386_p7 = scmp.lt.s32.totalorder %s1377_s25, %s1377_s25 }
  0x1b   : > { %p1380_p0 = pnand %p1378_p13, %p1368_p12  ;;  %p1387_p9 = por %p1386_p7, %p1385_p5 }
  0x1d   : > { %p1381_p3 = pneg %p1380_p0 }
  0x1f   : > { %p1388_p10 = pnand %p1387_p9, %p1381_p3 }
  0x21   : > { %1391 = shalt.err (!%p1388_p10)
}
  0x22   : > { %s1911_s26 = smov 64   ;;  %s1912_s27 = smov 4  }
  0x23   : > { %s1923_s1 = sld [smem:[#allocation16_spill]]  ;;  %s1403_s14 = scalar_lea.vmem %s297_s22, 1024 }
  0x24   : > { %p1404_p13 = scmp.ne.s32.totalorder %s297_s22, %s1403_s14  ;;  %p1411_p3 = scmp.lt.s32.totalorder %s297_s22, %s297_s22 }
  0x25   : > { %p1412_p10 = scmp.lt.s32.totalorder %s1403_s14, %s1403_s14 }
  0x26   : > { %p1406_p0 = pnand %p1404_p13, %p1368_p12 }
  0x27   : > { %p1413_p7 = por %p1412_p10, %p1411_p3 }
  0x28   : > { %p1407_p5 = pneg %p1406_p0 }
  0x29   : > { %1264 = dma.hbm_to_vmem [thread:$0]  (!%p1681_p11), %s1923_s1, 1024, %s265_s19, [#allocation6], %s1911_s26, %s1911_s26, %s1912_s27  }
  0x2a   : > { %p1414_p9 = pnand %p1413_p7, %p1407_p5 }
  0x2c   : > { %1417 = shalt.err (!%p1414_p9)
}
  0x2d   : > { %s1924_s5 = sld [smem:[#allocation18_spill]]  ;;  %s1429_s19 = scalar_lea.vmem %s281_s24, 1024 }
  0x2e   : > { %p1430_p1 = scmp.ne.s32.totalorder %s281_s24, %s1429_s19  ;;  %p1437_p3 = scmp.lt.s32.totalorder %s281_s24, %s281_s24 }
  0x2f   : > { %p1438_p5 = scmp.lt.s32.totalorder %s1429_s19, %s1429_s19 }
  0x30   : > { %p1432_p13 = pnand %p1430_p1, %p1368_p12 }
  0x31   : > { %p1439_p10 = por %p1438_p5, %p1437_p3 }
  0x32   : > { %p1433_p0 = pneg %p1432_p13 }
  0x33   : > { %1270 = dma.hbm_to_vmem [thread:$0]  (!%p1681_p11), %s1924_s5, 1024, %s297_s22, [#allocation9], %s1911_s26, %s1911_s26, %s1912_s27  }
  0x34   : > { %p1440_p7 = pnand %p1439_p10, %p1433_p0 }
  0x36   : > { %1443 = shalt.err (!%p1440_p7)
}
  0x37   : > { %s1925_s3 = sld [smem:[#allocation17_spill]]  ;;  %s1577_s22 = smov [#allocation10]  }
  0x38   : > { %s312_s28 = sshll.u32 %s1577_s22, 4  ;;  %s313_s28 = int_to_ptr.vmem [resolvable:$true] %s312_s28 }
  0x39   : > { %s1455_s29 = scalar_lea.vmem %s313_s28, 1024  ;;  %p1463_p0 = scmp.lt.s32.totalorder %s313_s28, %s313_s28 }
  0x3a   : > { %p1456_p1 = scmp.ne.s32.totalorder %s313_s28, %s1455_s29  ;;  %p1464_p3 = scmp.lt.s32.totalorder %s1455_s29, %s1455_s29 }
  0x3c   : > { %p1458_p9 = pnand %p1456_p1, %p1368_p12  ;;  %p1465_p5 = por %p1464_p3, %p1463_p0 }
  0x3d   : > { %1267 = dma.hbm_to_vmem [thread:$0]  (!%p1681_p11), %s1925_s3, 1024, %s281_s24, [#allocation6], %s1911_s26, %s1911_s26, %s1912_s27  }
  0x3e   : > { %p1459_p13 = pneg %p1458_p9 }
  0x40   : > { %p1466_p10 = pnand %p1465_p5, %p1459_p13 }
  0x42   : > { %1469 = shalt.err (!%p1466_p10)
}
  0x43   : > { %1273 = dma.hbm_to_vmem [thread:$0]  (!%p1681_p11), %s1907_s7, 1024, %s313_s28, [#allocation9], %s1911_s26, %s1911_s26, %s1912_s27  }
  0x44   : > { %s1732_s18 = sadd.s32 1, %s1570_s12   ;;  %s34_s20 = sadd.s32 1, %s1566_s11 }
  0x45   : > { %s31_s21 = ssub.s32 %s1570_s12, %s1732_s18  ;;  %p41_p12 = scmp.ne.s32.totalorder %s1566_s11, %s1562_s10 }
  0x46   : > { %p32_p7 = scmp.eq.s32.totalorder %s31_s21, 0  ;;  %p42_p1 = scmp.eq.s32.totalorder %s1570_s12, 0 }
  0x47   : > { %p1742_p9 = por %p239_p2, %p41_p12  ;;  %p1286_p13 = scmp.lt.s32.totalorder %s1570_s12, 2 }
  0x48   : > { %s1748_s23 = scalar_select %p32_p7, %s1566_s11, %s34_s20  }
  0x49   : > { %s1926_s19 = scalar_select %p1742_p9, 1, 0 }
  0x4a   : > { %p43_p0 = por %p42_p1, %p41_p12  ;;  %s329_s25 = sand.u32 1, %s1566_s11  }
  0x4b   : > { %s1066_s22 = sshll.u32 %s329_s25, 4  ;;  %s1119_s28 = sshll.u32 %s1570_s12, 8 }
  0x4c   : > { %s1755_s14 = scalar_lea.hbm %s1900_s0, %s1119_s28  ;;  %s333_s21 = scalar_lea.vmem [#allocation2], %s1066_s22 }
  0x4d   : > { %s340_s26 = sshll.u32 %s333_s21, 4  ;;  %p1759_p2 = pnand %p1286_p13, %p43_p0  ;;  %s1757_s26 = int_to_ptr.vmem [resolvable:$true] %s340_s26 }
  0x4e   : > { %s1763_s20 = scalar_lea.sflag [#allocation3], %s329_s25  ;;  %s1470_s1 = scalar_lea.hbm %s1755_s14, 256 }
  0x4f   : > { %p1471_p11 = scmp.ne.s32.totalorder %s1755_s14, %s1470_s1  ;;  %p1472_p3 = pneg %p1759_p2 }
  0x50   : > { %s1475_s22 = scalar_lea.hbm %s1900_s0, 512  ;;  %p1476_p12 = scmp.lt.s32.totalorder %s1755_s14, %s1900_s0 }
  0x51   : > { %p1473_p5 = pnand %p1472_p3, %p1471_p11  ;;  %p1477_p7 = scmp.lt.s32.totalorder %s1475_s22, %s1470_s1 }
  0x53   : > { %p1474_p10 = pneg %p1473_p5  ;;  %p1478_p1 = por %p1477_p7, %p1476_p12 }
  0x55   : > { %p1479_p13 = pnand %p1478_p1, %p1474_p10 }
  0x57   : > { %1482 = shalt.err (!%p1479_p13)
}
  0x58   : > { %s1483_s25 = scalar_lea.vmem %s1757_s26, 256  ;;  %s1578_s3 = smov [#allocation2]  }
  0x59   : > { %p1484_p0 = scmp.ne.s32.totalorder %s1757_s26, %s1483_s25  ;;  %s1488_s5 = sshll.u32 %s1578_s3, 4  ;;  %s1489_s5 = int_to_ptr.vmem [resolvable:$false] %s1488_s5 }
  0x5a   : > { %s1490_s28 = scalar_lea.vmem %s1489_s5, 512  ;;  %p1491_p5 = scmp.lt.s32.totalorder %s1757_s26, %s1489_s5 }
  0x5b   : > { %p1486_p6 = pnand %p1484_p0, %p1472_p3  ;;  %p1492_p9 = scmp.lt.s32.totalorder %s1490_s28, %s1483_s25 }
  0x5d   : > { %p1487_p11 = pneg %p1486_p6  ;;  %p1493_p4 = por %p1492_p9, %p1491_p5 }
  0x5f   : > { %p1494_p8 = pnand %p1493_p4, %p1487_p11 }
  0x61   : > { %1497 = shalt.err (!%p1494_p8)
}
  0x62   : > { %s1928_s1 = smov 4   ;;  %s1929_s29 = smov 64  }
  0x63   : > { %1277 = dma.hbm_to_vmem [thread:$0]  (!%p1759_p2), %s1755_s14, 256, %s1757_s26, %s1763_s20, %s1929_s29, %s1929_s29, %s1928_s1  }
  0x64   : > { %p1930_p6 = scmp.ne.s32.totalorder %s1921_s17, 0 }
  0x65   : > { %s1790_s3 = sand.u32 (!%p1930_p6), 1, %s1562_s10   ;;  %p1931_p4 = scmp.ne.s32.totalorder (!%p1930_p6), %s1919_s15, 0 }
  0x66   : > { %352 = sbr.rel (%p1930_p6) target bundleno = 982 (0x3d6), region = 56  ;;  %s1070_s5 = sshll.u32 (!%p1930_p6), %s1790_s3, 4 }
  0x67   : > { %s355_s22 = scalar_lea.sflag (!%p1930_p6), [#allocation3], %s1790_s3  ;;  %s1794_s24 = scalar_lea.vmem (!%p1930_p6), [#allocation2], %s1070_s5 }
  0x6b   : > { %1541 = dma.done.wait (%p1931_p4), %s355_s22, 256  }
  0x6c   : > { %1543 = vsyncadd (%p1931_p4), %s355_s22, 4294967040  ;;  %p1932_p8 = scmp.eq.s32.totalorder %s1653_s13, 0 }
  0x6e   : > { %1545 = dma.done.wait (%p1932_p8), [#allocation6], 2048   ;;  %p1933_p9 = pmov %p1932_p8 }
  0x6f   : > { %p1934_p2 = pmov %p1932_p8 }
  0x70   : > { %1547 = vsyncadd (%p1933_p9), [#allocation6], 4294965248 }
  0x71   : > { %1549 = dma.done.wait (%p1934_p2), [#allocation9], 2048   ;;  %p1935_p3 = pmov %p1934_p2 }
  0x72   : > { %v1332_v0 = vld [vmem:[#allocation5 + $0x38] sm:$0xff]   ;;  %v1333_v1 = vld [vmem:[#allocation5 + $0x30] sm:$0xff]   ;;  %v1334_v2 = vld [vmem:[#allocation5 + $0x28] sm:$0xff]   ;;  %s1075_s21 = sshll.u32 %s1790_s3, 5  ;;  %s1120_s5 = sshll.u32 %s1653_s13, 9 }
  0x73   : > { %1551 = vsyncadd (%p1935_p3), [#allocation9], 4294965248  ;;  %1161 = vmatprep.subr.bf16.mxu0 %v1332_v0  ;;  %v1335_v3 = vld [vmem:[#allocation5 + $0x20] sm:$0xff]   ;;  %v1342_v5 = vld [vmem:[#allocation7 + $0x38] sm:$0xff]   ;;  %s408_s1 = scalar_lea.vmem [#allocation11], %s1075_s21  ;;  %s1857_s15 = scalar_lea.hbm %s1909_s9, %s1120_s5 }
  0x74   : > { %1162 = vmatpush3.bf16.msra.mxu0 %v1332_v0  ;;  %v1340_v4 = vld [vmem:[%s1794_s24] sm:$0xff]   ;;  %v1336_v7 = vld [vmem:[#allocation5 + $0x18] sm:$0xff]   ;;  %1181 = vmatprep.subr.bf16.mxu1 %v1342_v5  ;;  %v1344_v9 = vld [vmem:[#allocation7 + $0x28] sm:$0xff]   ;;  %s948_s29 = sshll.u32 %s408_s1, 4  ;;  %s935_s17 = scalar_lea.sflag [#allocation4], %s1790_s3  ;;  %s1852_s29 = int_to_ptr.vmem [resolvable:$true] %s948_s29 }
  0x75   : > { %1163 = vmatprep.subr.bf16.mxu0 %v1333_v1  ;;  %1177 = vmatprep.mubr.bf16.mxu0 %v1340_v4  ;;  %v1343_v6 = vld [vmem:[#allocation7 + $0x30] sm:$0xff]   ;;  %v1345_v10 = vld [vmem:[#allocation7 + $0x20] sm:$0xff]   ;;  %v1338_v11 = vld [vmem:[#allocation5 + $0x8] sm:$0xff]   ;;  %s1498_s26 = scalar_lea.vmem %s1852_s29, 512  ;;  %p1936_p12 = scmp.ne.s32.totalorder %s1926_s19, 0 }
  0x76   : > { %1182 = vmatpush3.bf16.msra.mxu1 %v1342_v5  ;;  %v1337_v8 = vld [vmem:[#allocation5 + $0x10] sm:$0xff]   ;;  %v1346_v12 = vld [vmem:[#allocation7 + $0x18] sm:$0xff]   ;;  %v1339_v13 = vld [vmem:[#allocation5] sm:$0xff]   ;;  %p1499_p10 = scmp.ne.s32.totalorder %s1852_s29, %s1498_s26  ;;  %s1579_s13 = smov [#allocation11]  }
  0x77   : > { %1183 = vmatprep.subr.bf16.mxu1 %v1343_v6  ;;  %v1341_v14 = vld [vmem:[%s1794_s24 + $0x8] sm:$0xff]   ;;  %v1347_v15 = vld [vmem:[#allocation7 + $0x10] sm:$0xff]   ;;  %v1349_v17 = vld [vmem:[#allocation7] sm:$0xff]   ;;  %s1502_s27 = sshll.u32 %s1579_s13, 4  ;;  %s1503_s27 = int_to_ptr.vmem [resolvable:$false] %s1502_s27 }
  0x78   : > { %1164 = vmatpush3.bf16.msra.mxu0 %v1333_v1  ;;  %v1348_v16 = vld [vmem:[#allocation7 + $0x8] sm:$0xff]   ;;  %v1350_v18 = vld [vmem:[#allocation8 + $0x38] sm:$0xff]   ;;  %v1351_v19 = vld [vmem:[#allocation8 + $0x30] sm:$0xff]   ;;  %p1500_p7 = pnand %p1499_p10, %p1936_p12  ;;  %s1504_s14 = scalar_lea.vmem %s1503_s27, 1024 }
  0x79   : > { %1165 = vmatprep.subr.bf16.mxu0 %v1334_v2  ;;  %v1352_v20 = vld [vmem:[#allocation8 + $0x28] sm:$0xff]   ;;  %v1353_v21 = vld [vmem:[#allocation8 + $0x20] sm:$0xff]   ;;  %v1354_v22 = vld [vmem:[#allocation8 + $0x18] sm:$0xff]   ;;  %p1505_p13 = scmp.lt.s32.totalorder %s1852_s29, %s1503_s27  ;;  %p1506_p0 = scmp.lt.s32.totalorder %s1504_s14, %s1498_s26 }
  0x7a   : > { %1184 = vmatpush3.bf16.msra.mxu1 %v1343_v6  ;;  %v1076_v25 = vld [vmem:[%s1902_s2] ss:$0 sm:$0xff]  ;;  %v1355_v38 = vld [vmem:[#allocation8 + $0x10] sm:$0xff]   ;;  %v1356_v39 = vld [vmem:[#allocation8 + $0x8] sm:$0xff]   ;;  %p1501_p1 = pneg %p1500_p7 }
  0x7b   : > { %1185 = vmatprep.subr.bf16.mxu1 %v1344_v9  ;;  %v1357_v40 = vld [vmem:[#allocation8] sm:$0xff]   ;;  %v1358_v41 = vld [vmem:[#allocation10 + $0x38] sm:$0xff]   ;;  %v1359_v42 = vld [vmem:[#allocation10 + $0x30] sm:$0xff]   ;;  %p1507_p11 = por %p1506_p0, %p1505_p13 }
  0x7c   : > { %1166 = vmatpush3.bf16.msra.mxu0 %v1334_v2  ;;  %v1360_v43 = vld [vmem:[#allocation10 + $0x28] sm:$0xff]   ;;  %v1361_v44 = vld [vmem:[#allocation10 + $0x20] sm:$0xff]   ;;  %v1362_v60 = vld [vmem:[#allocation10 + $0x18] sm:$0xff]  }
  0x7d   : > { %1167 = vmatprep.subr.bf16.mxu0 %v1335_v3  ;;  %v1087_v47 = vld [vmem:[%s1904_s4] ss:$0 sm:$0xff]  ;;  %v1363_v61 = vld [vmem:[#allocation10 + $0x10] sm:$0xff]   ;;  %v1364_v62 = vld [vmem:[#allocation10 + $0x8] sm:$0xff]   ;;  %p1508_p5 = pnand %p1507_p11, %p1501_p1 }
  0x7e   : > { %1186 = vmatpush3.bf16.msra.mxu1 %v1344_v9  ;;  %v1365_v63 = vld [vmem:[#allocation10] sm:$0xff]  }
  0x7f   : > { %1187 = vmatprep.subr.bf16.mxu1 %v1345_v10  ;;  %v1096_v1 = vld [vmem:[%s1906_s6] ss:$0 sm:$0xff] }
  0x80   : > { %1168 = vmatpush3.bf16.msra.mxu0 %v1335_v3 }
  0x81   : > { %1169 = vmatprep.subr.bf16.mxu0 %v1336_v7 }
  0x82   : > { %1188 = vmatpush3.bf16.msra.mxu1 %v1345_v10 }
  0x83   : > { %1189 = vmatprep.subr.bf16.mxu1 %v1346_v12 }
  0x84   : > { %1170 = vmatpush3.bf16.msra.mxu0 %v1336_v7 }
  0x85   : > { %1171 = vmatprep.subr.bf16.mxu0 %v1337_v8 }
  0x86   : > { %1190 = vmatpush3.bf16.msra.mxu1 %v1346_v12 }
  0x87   : > { %1191 = vmatprep.subr.bf16.mxu1 %v1347_v15 }
  0x88   : > { %1172 = vmatpush3.bf16.msra.mxu0 %v1337_v8 }
  0x89   : > { %1173 = vmatprep.subr.bf16.mxu0 %v1338_v11 }
  0x8a   : > { %1192 = vmatpush3.bf16.msra.mxu1 %v1347_v15 }
  0x8b   : > { %1193 = vmatprep.subr.bf16.mxu1 %v1348_v16 }
  0x8c   : > { %1174 = vmatpush3.bf16.msra.mxu0 %v1338_v11 }
  0x8d   : > { %1175 = vmatprep.subr.bf16.mxu0 %v1339_v13 }
  0x8e   : > { %1194 = vmatpush3.bf16.msra.mxu1 %v1348_v16 }
  0x8f   : > { %1195 = vmatprep.subr.bf16.mxu1 %v1349_v17 }
  0x90   : > { %1176 = vmatpush3.bf16.msra.mxu0 %v1339_v13 }
  0x91   : > { %1201 = vmatprep.subr.bf16.mxu0 %v1350_v18 }
  0x92   : > { %1196 = vmatpush3.bf16.msra.mxu1 %v1349_v17 }
  0x93   : > { %1178 = vmatmul.mubr.bf16.vlgmr.msra.gmra.mxu0 %v1341_v14  ;;  %1221 = vmatprep.subr.bf16.mxu1 %v1358_v41 }
  0x94   : > { %1202 = vmatpush3.bf16.msra.mxu0 %v1350_v18 }
  0x95   : > { %1203 = vmatprep.subr.bf16.mxu0 %v1351_v19 }
  0x98   : > { %1204 = vmatpush3.bf16.msra.mxu0 %v1351_v19  ;;  %v1105_v19 = vld [vmem:[%s1908_s8] ss:$0 sm:$0xff] }
  0x99   : > { %1205 = vmatprep.subr.bf16.mxu0 %v1352_v20 }
  0x9c   : > { %1206 = vmatpush3.bf16.msra.mxu0 %v1352_v20 }
  0x9d   : > { %1207 = vmatprep.subr.bf16.mxu0 %v1353_v21 }
  0xa0   : > { %1208 = vmatpush3.bf16.msra.mxu0 %v1353_v21 }
  0xa1   : > { %1209 = vmatprep.subr.bf16.mxu0 %v1354_v22 }
  0xa4   : > { %1210 = vmatpush3.bf16.msra.mxu0 %v1354_v22 }
  0xa5   : > { %1211 = vmatprep.subr.bf16.mxu0 %v1355_v38 }
  0xa8   : > { %1212 = vmatpush3.bf16.msra.mxu0 %v1355_v38 }
  0xa9   : > { %1213 = vmatprep.subr.bf16.mxu0 %v1356_v39 }
  0xac   : > { %1214 = vmatpush3.bf16.msra.mxu0 %v1356_v39 }
  0xad   : > { %1215 = vmatprep.subr.bf16.mxu0 %v1357_v40 }
  0xb0   : > { %1216 = vmatpush3.bf16.msra.mxu0 %v1357_v40 }
 0x153   : > { %v1179_v23 = vpop.f32.mrf.mxu0 }
 0x154   : > { %v1817_v29 = vadd.f32 %v1179_v23, %v1076_v25 }
 0x155   : > { %v533_v24 = vpop.f32.mrf.mxu0 }
 0x156   : > { %v1813_v27 = vadd.f32 %v1076_v25, %v533_v24  ;;  %v550_v35 = vmax.f32 %v1817_v29, 0.0 }
 0x157   : > { %v1180_v26 = vpop.f32.mrf.mxu0 }
 0x158   : > { %v1815_v28 = vadd.f32 %v1180_v26, %v1076_v25  ;;  %v548_v33 = vmax.f32 %v1813_v27, 0.0 }
 0x159   : > { %v536_v30 = vpop.f32.mrf.mxu0 }
 0x15a   : > { %v1819_v31 = vadd.f32 %v1076_v25, %v536_v30  ;;  %v551_v32 = vmax.f32 %v1815_v28, 0.0 }
 0x15c   : > { %v549_v34 = vmax.f32 %v1819_v31, 0.0  ;;  %v553_v37 = vpack.c.bf16 %v551_v32, %v550_v35 }
 0x15e   : > { %v552_v36 = vpack.c.bf16 %v549_v34, %v548_v33 }
 0x160   : > { %1197 = vmatprep.mubr.bf16.mxu1 %v552_v36 }
 0x161   : > { %1198 = vmatmul.mubr.bf16.vlgmr.msra.gmra.mxu1 %v553_v37 }
 0x162   : > { %1222 = vmatpush3.bf16.msra.mxu1 %v1358_v41 }
 0x163   : > { %1223 = vmatprep.subr.bf16.mxu1 %v1359_v42 }
 0x166   : > { %1224 = vmatpush3.bf16.msra.mxu1 %v1359_v42 }
 0x167   : > { %1225 = vmatprep.subr.bf16.mxu1 %v1360_v43 }
 0x16a   : > { %1226 = vmatpush3.bf16.msra.mxu1 %v1360_v43 }
 0x16b   : > { %1227 = vmatprep.subr.bf16.mxu1 %v1361_v44 }
 0x16e   : > { %1228 = vmatpush3.bf16.msra.mxu1 %v1361_v44 }
 0x16f   : > { %1229 = vmatprep.subr.bf16.mxu1 %v1362_v60 }
 0x172   : > { %1230 = vmatpush3.bf16.msra.mxu1 %v1362_v60 }
 0x173   : > { %1231 = vmatprep.subr.bf16.mxu1 %v1363_v61 }
 0x176   : > { %1232 = vmatpush3.bf16.msra.mxu1 %v1363_v61 }
 0x177   : > { %1233 = vmatprep.subr.bf16.mxu1 %v1364_v62 }
 0x17a   : > { %1234 = vmatpush3.bf16.msra.mxu1 %v1364_v62 }
 0x17b   : > { %1235 = vmatprep.subr.bf16.mxu1 %v1365_v63 }
 0x17e   : > { %1236 = vmatpush3.bf16.msra.mxu1 %v1365_v63 }
 0x221   : > { %v1199_v45 = vpop.f32.mrf.mxu1 }
 0x222   : > { %v668_v51 = vadd.f32 %v1199_v45, %v1087_v47 }
 0x223   : > { %v659_v46 = vpop.f32.mrf.mxu1 }
 0x224   : > { %v660_v49 = vadd.f32 %v1087_v47, %v659_v46  ;;  %v676_v57 = vmax.f32 %v668_v51, 0.0 }
 0x225   : > { %v1200_v48 = vpop.f32.mrf.mxu1 }
 0x226   : > { %v671_v50 = vadd.f32 %v1200_v48, %v1087_v47  ;;  %v674_v55 = vmax.f32 %v660_v49, 0.0 }
 0x227   : > { %v662_v52 = vpop.f32.mrf.mxu1 }
 0x228   : > { %v663_v53 = vadd.f32 %v1087_v47, %v662_v52  ;;  %v677_v54 = vmax.f32 %v671_v50, 0.0 }
 0x22a   : > { %v675_v56 = vmax.f32 %v663_v53, 0.0  ;;  %v679_v59 = vpack.c.bf16 %v677_v54, %v676_v57 }
 0x22c   : > { %v678_v58 = vpack.c.bf16 %v675_v56, %v674_v55 }
 0x22e   : > { %1217 = vmatprep.mubr.bf16.mxu0 %v678_v58 }
 0x22f   : > { %1218 = vmatmul.mubr.bf16.vlgmr.msra.gmra.mxu0 %v679_v59 }
 0x2ef   : > { %v1219_v0 = vpop.f32.mrf.mxu0 }
 0x2f0   : > { %v794_v4 = vadd.f32 %v1219_v0, %v1096_v1 }
 0x2f1   : > { %v785_v2 = vpop.f32.mrf.mxu0 }
 0x2f2   : > { %v786_v3 = vadd.f32 %v1096_v1, %v785_v2  ;;  %v802_v11 = vadd.f32 %v794_v4, %v550_v35 }
 0x2f3   : > { %v1220_v5 = vpop.f32.mrf.mxu0 }
 0x2f4   : > { %v797_v6 = vadd.f32 %v1220_v5, %v1096_v1  ;;  %v800_v8 = vadd.f32 %v786_v3, %v548_v33  ;;  %v806_v16 = vmax.f32 %v802_v11, 0.0 }
 0x2f5   : > { %v788_v7 = vpop.f32.mrf.mxu0 }
 0x2f6   : > { %v803_v9 = vadd.f32 %v797_v6, %v551_v32  ;;  %v789_v10 = vadd.f32 %v1096_v1, %v788_v7  ;;  %v804_v14 = vmax.f32 %v800_v8, 0.0 }
 0x2f8   : > { %v801_v12 = vadd.f32 %v789_v10, %v549_v34  ;;  %v807_v13 = vmax.f32 %v803_v9, 0.0 }
 0x2fa   : > { %v805_v15 = vmax.f32 %v801_v12, 0.0  ;;  %v809_v18 = vpack.c.bf16 %v807_v13, %v806_v16 }
 0x2fc   : > { %v808_v17 = vpack.c.bf16 %v805_v15, %v804_v14 }
 0x2fe   : > { %1237 = vmatprep.mubr.bf16.mxu1 %v808_v17 }
 0x2ff   : > { %1238 = vmatmul.mubr.bf16.vlgmr.msra.gmra.mxu1 %v809_v18 }
 0x3bf   : > { %v1239_v20 = vpop.f32.mrf.mxu1 }
 0x3c0   : > { %v924_v21 = vadd.f32 %v1239_v20, %v1105_v19 }
 0x3c1   : > { %v915_v22 = vpop.f32.mrf.mxu1 }
 0x3c2   : > { %932 = vst [vmem:[%s408_s1 + $0x10] sm:$0xff] %v924_v21  ;;  %v916_v23 = vadd.f32 %v1105_v19, %v915_v22 }
 0x3c3   : > { %v1240_v24 = vpop.f32.mrf.mxu1 }
 0x3c4   : > { %930 = vst [vmem:[%s408_s1] sm:$0xff] %v916_v23  ;;  %v927_v25 = vadd.f32 %v1240_v24, %v1105_v19 }
 0x3c5   : > { %v918_v26 = vpop.f32.mrf.mxu1 }
 0x3c6   : > { %933 = vst [vmem:[%s408_s1 + $0x18] sm:$0xff] %v927_v25  ;;  %v919_v27 = vadd.f32 %v1105_v19, %v918_v26 }
 0x3c8   : > { %931 = vst [vmem:[%s408_s1 + $0x8] sm:$0xff] %v919_v27 }
 0x3c9   : > { %1511 = shalt.err (!%p1508_p5)
}
 0x3ca   : > { %s1512_s20 = scalar_lea.hbm %s1857_s15, 512  ;;  %s1516_s28 = scalar_lea.hbm %s1909_s9, 1024 }
 0x3cb   : > { %p1513_p6 = scmp.ne.s32.totalorder %s1857_s15, %s1512_s20  ;;  %p1517_p9 = scmp.lt.s32.totalorder %s1857_s15, %s1909_s9 }
 0x3cc   : > { %p1518_p2 = scmp.lt.s32.totalorder %s1516_s28, %s1512_s20 }
 0x3cd   : > { %p1514_p4 = pnand %p1513_p6, %p1936_p12 }
 0x3ce   : > { %p1519_p3 = por %p1518_p2, %p1517_p9 }
 0x3cf   : > { %p1515_p8 = pneg %p1514_p4 }
 0x3d1   : > { %p1520_p10 = pnand %p1519_p3, %p1515_p8 }
 0x3d3   : > { %1523 = shalt.err (!%p1520_p10)
}
 0x3d4   : > { %s1580_s22 = smov 128   ;;  %s1581_s24 = smov 8  }
 0x3d5   : > { %1259 = dma.vmem_to_hbm [thread:$0]  (%p1936_p12), %s1852_s29, 512, %s1857_s15, %s935_s17, %s1580_s22, %s1580_s22, %s1581_s24  }
 0x3d6 PF: > { %s963_s26 = sand.u32 1, %s1558_s30   ;;  %p1937_p7 = scmp.ne.s32.totalorder %s1920_s16, 0 }
 0x3d7   : > { %p1938_p1 = scmp.ge.s32.totalorder %s1570_s12, 2  ;;  %s964_s13 = scalar_lea.sflag [#allocation4], %s963_s26 }
 0x3d9   : > { %p1279_p13 = pnand %p1938_p1, %p1937_p7 }
 0x3db   : > { %p1280_p0 = pneg %p1279_p13 }
 0x3dd   : > { %1553 = dma.done.wait (%p1280_p0), %s964_s13, 512  }
 0x3de   : > { %1555 = vsyncadd (%p1280_p0), %s964_s13, 4294966784  ;;  %p24_p11 = scmp.ge.s32.totalorder %s1732_s18, 4   ;;  %s1939_s30 = smov %s1562_s10 }
 0x3df   : > { %s1940_s10 = smov %s1566_s11  ;;  %s1941_s11 = smov %s1748_s23 }
 0x3e0   : > { %s1942_s12 = smov %s1732_s18  ;;  %26 = sbr.rel (!%p24_p11) target bundleno = 11 (0xb), region = 117 }
 0x3e5   :  { %969 = vsyncpa [#allocation3], 1 }
 0x3e6   :  { %971 = vsyncpa [#allocation3 + $0x1], 1 }
 0x3e7   :  { %972 = vsyncpa [#allocation6], 1 }
 0x3e8   :  { %973 = vsyncpa [#allocation9], 1 }
 0x3e9   :  { %974 = vsyncpa [#allocation4], 1 }
 0x3ea   :  { %976 = vsyncpa [#allocation4 + $0x1], 1 }

</bundles_post_ra>
